<compile_context>
chip_gen: v7x
topology: tpu7x:2x2x1
jax: 0.10.0
libtpu: 0.0.40
codegen_flags: <defaults>
</compile_context>

<pallas_src>
import jax
import jax.numpy as jnp
from jax.experimental import pallas as pl
from jax.experimental.pallas import tpu as pltpu

LANE = 128      # lane width (last dim)
SUBLANE = 8     # sublane width (second-to-last dim)


def _round_up(x, m):
    return ((x + m - 1) // m) * m


def _mlp_kernel(x_ref,
                w1_ref, b1_ref,
                w2_ref, b2_ref,
                w3_ref, b3_ref,
                w4_ref, b4_ref,
                o_ref,
                *, out_dim):
    # All matmuls run in bf16 on the MXU with f32 accumulation; bias-add and
    # activations stay in f32.
    x = x_ref[...].astype(jnp.bfloat16)

    h = jnp.dot(x, w1_ref[...], preferred_element_type=jnp.float32)
    h = jnp.maximum(h + b1_ref[...], 0.0)

    h = jnp.dot(h.astype(jnp.bfloat16), w2_ref[...], preferred_element_type=jnp.float32)
    h = jnp.maximum(h + b2_ref[...], 0.0)

    h = jnp.dot(h.astype(jnp.bfloat16), w3_ref[...], preferred_element_type=jnp.float32)
    h = jnp.maximum(h + b3_ref[...], 0.0)

    z = jnp.dot(h.astype(jnp.bfloat16), w4_ref[...], preferred_element_type=jnp.float32)
    z = z + b4_ref[...]

    # sigmoid(z) = 1 / (1 + exp(-z)); exp and the approximate reciprocal both
    # run on the otherwise-idle EUP slot, so the epilogue is nearly free.
    # Only the first out_dim (real) columns are stored; the lane-padded rest of
    # z is dropped on the floor (static slice, masked store).
    s = pl.reciprocal(1.0 + jnp.exp(-z), approx=True)
    o_ref[...] = s[:, :out_dim].astype(o_ref.dtype)


def _prepare_params(params):
    """Pad fan_out (and matching fan_in) dims to 128 lanes, cast weights to bf16.

    Padded weight columns / bias entries are exactly zero, so padded activation
    lanes are exactly zero after ReLU and do not perturb downstream layers.
    (Padding stays at 128 lanes on purpose: the kernel is HBM/overhead-bound,
    not MXU-bound, so chasing the 256-wide MXU on v6e/v7x would only add
    zero-work and VMEM traffic.)
    """
    prepped = []
    for i in range(1, 5):
        w = params[f"w{i}"]
        b = params[f"b{i}"].reshape(1, -1)
        fan_in, fan_out = w.shape
        # Layer 1's fan_in is the raw input feature dim (x is not padded); deeper
        # layers' fan_in must match the previous layer's lane-padded output width.
        fi_p = fan_in if i == 1 else _round_up(fan_in, LANE)
        fo_p = _round_up(fan_out, LANE)
        w_p = jnp.zeros((fi_p, fo_p), jnp.bfloat16)
        w_p = w_p.at[:fan_in, :fan_out].set(w.astype(jnp.bfloat16))
        b_p = jnp.zeros((1, fo_p), jnp.float32)
        b_p = b_p.at[:, :fan_out].set(b.astype(jnp.float32))
        prepped += [w_p, b_p]
    return prepped


def neuralnetwork3_forward(x, params, tile_b=None):
    """Fused 4-layer MLP forward pass (single Pallas kernel, batch-tiled grid).

    x: (batch, in_dim) float32
    params: dict with w1..w4 of shape (fan_in, fan_out) and b1..b4 of shape (1, fan_out)
    returns: (batch, out_dim) float32
    """
    batch, in_dim = x.shape
    out_dim = params["w4"].shape[1]

    ops = _prepare_params(params)          # [w1,b1,w2,b2,w3,b3,w4,b4], lane-padded

    # Batch tile: multiple of 8 sublanes, capped at 1024 rows (per-step VMEM is
    # still only a few MiB including double-buffered x/out and ~100 KiB of
    # resident weights). Default aims for >= 2 grid steps so v7x's 2 TensorCores
    # both get work for moderate batches.
    if tile_b is None:
        tile_b = min(1024, _round_up(pl.cdiv(batch, 2), SUBLANE))
    tile_b = max(SUBLANE, _round_up(tile_b, SUBLANE))

    grid = (pl.cdiv(batch, tile_b),)       # ragged last block handled by Pallas masking

    x_spec = pl.BlockSpec((tile_b, in_dim), lambda i: (i, 0))
    # Unpadded output: last block dim == full array dim (out_dim), rows tiled.
    out_spec = pl.BlockSpec((tile_b, out_dim), lambda i: (i, 0))
    # Weights/biases: full-array blocks with a constant index_map -> fetched once,
    # VMEM-resident across all batch-tile steps.
    const_specs = [pl.BlockSpec(op.shape, lambda i: (0, 0)) for op in ops]

    import functools
    kernel = functools.partial(_mlp_kernel, out_dim=out_dim)

    out = pl.pallas_call(
        kernel,
        out_shape=jax.ShapeDtypeStruct((batch, out_dim), jnp.float32),
        grid=grid,
        in_specs=[x_spec] + const_specs,
        out_specs=out_spec,
        compiler_params=pltpu.CompilerParams(
            dimension_semantics=("parallel",),   # lets v7x shard batch over 2 TCs
        ),
    )(x, *ops)

    return out


def init_params(key, in_dim, n_hidden, out_dim):
    """Deterministic synthetic init (PyTorch-Linear-like uniform ranges)."""
    dims = [in_dim, 4 * n_hidden, 2 * n_hidden, n_hidden, out_dim]
    params = {}
    for i, (fan_in, fan_out) in enumerate(zip(dims[:-1], dims[1:]), start=1):
        key, kw, kb = jax.random.split(key, 3)
        bound = 1.0 / jnp.sqrt(jnp.float32(fan_in))
        params[f"w{i}"] = jax.random.uniform(
            kw, (fan_in, fan_out), jnp.float32, minval=-bound, maxval=bound)
        params[f"b{i}"] = jax.random.uniform(
            kb, (1, fan_out), jnp.float32, minval=-bound, maxval=bound)
    return params


def reference_forward(x, params):
    """Pure-JAX reference mimicking the kernel's numerics (bf16 matmuls, f32 acc)."""
    def dot_bf16(a, w):
        return jnp.dot(a.astype(jnp.bfloat16), w.astype(jnp.bfloat16),
                       preferred_element_type=jnp.float32)
    h = jnp.maximum(dot_bf16(x, params["w1"]) + params["b1"], 0.0)
    h = jnp.maximum(dot_bf16(h, params["w2"]) + params["b2"], 0.0)
    h = jnp.maximum(dot_bf16(h, params["w3"]) + params["b3"], 0.0)
    return jax.nn.sigmoid(dot_bf16(h, params["w4"]) + params["b4"])


if __name__ == "__main__":
    # Module-consistent small shapes: in_dim=16, n_hidden=32, out_dim=8.
    in_dim, n_hidden, out_dim = 16, 32, 8

    key = jax.random.PRNGKey(0)
    key, kx1, kx2 = jax.random.split(key, 3)
    params = init_params(key, in_dim, n_hidden, out_dim)

    # Case 1: tiny batch (single grid step, unpadded output path).
    x_small = jax.random.normal(kx1, (8, in_dim), jnp.float32)
    out_small = jax.block_until_ready(neuralnetwork3_forward(x_small, params))
    ref_small = reference_forward(x_small, params)
    assert out_small.shape == (8, out_dim)
    assert jnp.allclose(out_small, ref_small, atol=2e-2, rtol=2e-2), \
        "mismatch vs JAX reference (small batch)"

    # Case 2: non-multiple batch, default tiling -> 2 grid steps, ragged last block.
    x_big = jax.random.normal(kx2, (300, in_dim), jnp.float32)
    out_big = jax.block_until_ready(neuralnetwork3_forward(x_big, params))
    ref_big = reference_forward(x_big, params)
    assert out_big.shape == (300, out_dim)
    assert jnp.allclose(out_big, ref_big, atol=2e-2, rtol=2e-2), \
        "mismatch vs JAX reference (default tiling, ragged last block)"

    # Case 3: explicit small tile to exercise a 3-step grid with masking.
    out_big2 = jax.block_until_ready(neuralnetwork3_forward(x_big, params, tile_b=128))
    assert out_big2.shape == (300, out_dim)
    assert jnp.allclose(out_big2, ref_big, atol=2e-2, rtol=2e-2), \
        "mismatch vs JAX reference (tile_b=128 grid)"

    print("KERNEL_OK")
</pallas_src>

<mosaic_0001>
module attributes {stable_mosaic.version = 11 : i64} {
  func.func @_mlp_kernel(%arg0: i32, %arg1: memref<8x16xf32, #tpu.memory_space<vmem>>, %arg2: memref<16x128xbf16, #tpu.memory_space<vmem>>, %arg3: memref<1x128xf32, #tpu.memory_space<vmem>>, %arg4: memref<128x128xbf16, #tpu.memory_space<vmem>>, %arg5: memref<1x128xf32, #tpu.memory_space<vmem>>, %arg6: memref<128x128xbf16, #tpu.memory_space<vmem>>, %arg7: memref<1x128xf32, #tpu.memory_space<vmem>>, %arg8: memref<128x128xbf16, #tpu.memory_space<vmem>>, %arg9: memref<1x128xf32, #tpu.memory_space<vmem>>, %arg10: memref<8x8xf32, #tpu.memory_space<vmem>>) attributes {dimension_semantics = [#tpu.dimension_semantics<parallel>], iteration_bounds = array<i64: 1>, scalar_prefetch = 0 : i64, scratch_operands = 0 : i64, tpu.core_type = #tpu.core_type<tc>, window_params = [{transform_indices = @transform_0, window_bounds = array<i64: 8, 16>}, {pipeline_mode = #tpu.pipeline_mode<synchronous>, transform_indices = @transform_1, window_bounds = array<i64: 16, 128>}, {pipeline_mode = #tpu.pipeline_mode<synchronous>, transform_indices = @transform_2, window_bounds = array<i64: 1, 128>}, {pipeline_mode = #tpu.pipeline_mode<synchronous>, transform_indices = @transform_3, window_bounds = array<i64: 128, 128>}, {pipeline_mode = #tpu.pipeline_mode<synchronous>, transform_indices = @transform_4, window_bounds = array<i64: 1, 128>}, {pipeline_mode = #tpu.pipeline_mode<synchronous>, transform_indices = @transform_5, window_bounds = array<i64: 128, 128>}, {pipeline_mode = #tpu.pipeline_mode<synchronous>, transform_indices = @transform_6, window_bounds = array<i64: 1, 128>}, {pipeline_mode = #tpu.pipeline_mode<synchronous>, transform_indices = @transform_7, window_bounds = array<i64: 128, 128>}, {pipeline_mode = #tpu.pipeline_mode<synchronous>, transform_indices = @transform_8, window_bounds = array<i64: 1, 128>}, {transform_indices = @transform_9, window_bounds = array<i64: 8, 8>}]} {
    %c0 = arith.constant 0 : index
    %c0_0 = arith.constant 0 : index
    %0 = vector.load %arg1[%c0, %c0_0] : memref<8x16xf32, #tpu.memory_space<vmem>>, vector<8x16xf32>
    %1 = arith.truncf %0 : vector<8x16xf32> to vector<8x16xbf16>
    %c0_1 = arith.constant 0 : index
    %c0_2 = arith.constant 0 : index
    %2 = vector.load %arg2[%c0_1, %c0_2] : memref<16x128xbf16, #tpu.memory_space<vmem>>, vector<16x128xbf16>
    %cst = arith.constant dense<0.000000e+00> : vector<8x128xf32>
    %3 = tpu.matmul %1, %2, %cst {dimension_numbers = #tpu.dot_dimension_numbers<[1], [0], [0], [1], [0, 0, 1, 1], [], []>} : vector<8x16xbf16>, vector<16x128xbf16>, vector<8x128xf32> -> vector<8x128xf32>
    %c0_3 = arith.constant 0 : index
    %c0_4 = arith.constant 0 : index
    %4 = vector.load %arg3[%c0_3, %c0_4] : memref<1x128xf32, #tpu.memory_space<vmem>>, vector<1x128xf32>
    %5 = vector.broadcast %4 : vector<1x128xf32> to vector<8x128xf32>
    %6 = arith.addf %3, %5 : vector<8x128xf32>
    %cst_5 = arith.constant 0.000000e+00 : f32
    %7 = vector.broadcast %cst_5 : f32 to vector<8x128xf32>
    %8 = arith.maximumf %6, %7 : vector<8x128xf32>
    %9 = arith.truncf %8 : vector<8x128xf32> to vector<8x128xbf16>
    %c0_6 = arith.constant 0 : index
    %c0_7 = arith.constant 0 : index
    %10 = vector.load %arg4[%c0_6, %c0_7] : memref<128x128xbf16, #tpu.memory_space<vmem>>, vector<128x128xbf16>
    %cst_8 = arith.constant dense<0.000000e+00> : vector<8x128xf32>
    %11 = tpu.matmul %9, %10, %cst_8 {dimension_numbers = #tpu.dot_dimension_numbers<[1], [0], [0], [1], [0, 0, 1, 1], [], []>} : vector<8x128xbf16>, vector<128x128xbf16>, vector<8x128xf32> -> vector<8x128xf32>
    %c0_9 = arith.constant 0 : index
    %c0_10 = arith.constant 0 : index
    %12 = vector.load %arg5[%c0_9, %c0_10] : memref<1x128xf32, #tpu.memory_space<vmem>>, vector<1x128xf32>
    %13 = vector.broadcast %12 : vector<1x128xf32> to vector<8x128xf32>
    %14 = arith.addf %11, %13 : vector<8x128xf32>
    %cst_11 = arith.constant 0.000000e+00 : f32
    %15 = vector.broadcast %cst_11 : f32 to vector<8x128xf32>
    %16 = arith.maximumf %14, %15 : vector<8x128xf32>
    %17 = arith.truncf %16 : vector<8x128xf32> to vector<8x128xbf16>
    %c0_12 = arith.constant 0 : index
    %c0_13 = arith.constant 0 : index
    %18 = vector.load %arg6[%c0_12, %c0_13] : memref<128x128xbf16, #tpu.memory_space<vmem>>, vector<128x128xbf16>
    %cst_14 = arith.constant dense<0.000000e+00> : vector<8x128xf32>
    %19 = tpu.matmul %17, %18, %cst_14 {dimension_numbers = #tpu.dot_dimension_numbers<[1], [0], [0], [1], [0, 0, 1, 1], [], []>} : vector<8x128xbf16>, vector<128x128xbf16>, vector<8x128xf32> -> vector<8x128xf32>
    %c0_15 = arith.constant 0 : index
    %c0_16 = arith.constant 0 : index
    %20 = vector.load %arg7[%c0_15, %c0_16] : memref<1x128xf32, #tpu.memory_space<vmem>>, vector<1x128xf32>
    %21 = vector.broadcast %20 : vector<1x128xf32> to vector<8x128xf32>
    %22 = arith.addf %19, %21 : vector<8x128xf32>
    %cst_17 = arith.constant 0.000000e+00 : f32
    %23 = vector.broadcast %cst_17 : f32 to vector<8x128xf32>
    %24 = arith.maximumf %22, %23 : vector<8x128xf32>
    %25 = arith.truncf %24 : vector<8x128xf32> to vector<8x128xbf16>
    %c0_18 = arith.constant 0 : index
    %c0_19 = arith.constant 0 : index
    %26 = vector.load %arg8[%c0_18, %c0_19] : memref<128x128xbf16, #tpu.memory_space<vmem>>, vector<128x128xbf16>
    %cst_20 = arith.constant dense<0.000000e+00> : vector<8x128xf32>
    %27 = tpu.matmul %25, %26, %cst_20 {dimension_numbers = #tpu.dot_dimension_numbers<[1], [0], [0], [1], [0, 0, 1, 1], [], []>} : vector<8x128xbf16>, vector<128x128xbf16>, vector<8x128xf32> -> vector<8x128xf32>
    %c0_21 = arith.constant 0 : index
    %c0_22 = arith.constant 0 : index
    %28 = vector.load %arg9[%c0_21, %c0_22] : memref<1x128xf32, #tpu.memory_space<vmem>>, vector<1x128xf32>
    %29 = vector.broadcast %28 : vector<1x128xf32> to vector<8x128xf32>
    %30 = arith.addf %27, %29 : vector<8x128xf32>
    %cst_23 = arith.constant 0.000000e+00 : f32
    %31 = vector.broadcast %cst_23 : f32 to vector<8x128xf32>
    %32 = arith.subf %31, %30 : vector<8x128xf32>
    %33 = math.exp %32 : vector<8x128xf32>
    %cst_24 = arith.constant 1.000000e+00 : f32
    %34 = vector.broadcast %cst_24 : f32 to vector<8x128xf32>
    %35 = arith.addf %34, %33 : vector<8x128xf32>
    %36 = tpu.reciprocal %35 {approx = true} : vector<8x128xf32> -> vector<8x128xf32>
    %37 = vector.extract_strided_slice %36 {offsets = [0, 0], sizes = [8, 8], strides = [1, 1]} : vector<8x128xf32> to vector<8x8xf32>
    %c0_25 = arith.constant 0 : index
    %c0_26 = arith.constant 0 : index
    %38 = vector.load %arg10[%c0_25, %c0_26] : memref<8x8xf32, #tpu.memory_space<vmem>>, vector<8x8xf32>
    tpu.vector_store %arg10[%c0_25, %c0_26], %37 {strides = array<i32>} : memref<8x8xf32, #tpu.memory_space<vmem>>, vector<8x8xf32>,
    return
  }
  func.func @transform_0(%arg0: i32) -> (i32, i32) {
    %c0_i32 = arith.constant 0 : i32
    %c0_i32_0 = arith.constant 0 : i32
    return %arg0, %c0_i32 : i32, i32
  }
  func.func @transform_1(%arg0: i32) -> (i32, i32) {
    %c0_i32 = arith.constant 0 : i32
    %c0_i32_0 = arith.constant 0 : i32
    %c0_i32_1 = arith.constant 0 : i32
    return %c0_i32, %c0_i32_0 : i32, i32
  }
  func.func @transform_2(%arg0: i32) -> (i32, i32) {
    %c0_i32 = arith.constant 0 : i32
    %c0_i32_0 = arith.constant 0 : i32
    %c0_i32_1 = arith.constant 0 : i32
    return %c0_i32, %c0_i32_0 : i32, i32
  }
  func.func @transform_3(%arg0: i32) -> (i32, i32) {
    %c0_i32 = arith.constant 0 : i32
    %c0_i32_0 = arith.constant 0 : i32
    %c0_i32_1 = arith.constant 0 : i32
    return %c0_i32, %c0_i32_0 : i32, i32
  }
  func.func @transform_4(%arg0: i32) -> (i32, i32) {
    %c0_i32 = arith.constant 0 : i32
    %c0_i32_0 = arith.constant 0 : i32
    %c0_i32_1 = arith.constant 0 : i32
    return %c0_i32, %c0_i32_0 : i32, i32
  }
  func.func @transform_5(%arg0: i32) -> (i32, i32) {
    %c0_i32 = arith.constant 0 : i32
    %c0_i32_0 = arith.constant 0 : i32
    %c0_i32_1 = arith.constant 0 : i32
    return %c0_i32, %c0_i32_0 : i32, i32
  }
  func.func @transform_6(%arg0: i32) -> (i32, i32) {
    %c0_i32 = arith.constant 0 : i32
    %c0_i32_0 = arith.constant 0 : i32
    %c0_i32_1 = arith.constant 0 : i32
    return %c0_i32, %c0_i32_0 : i32, i32
  }
  func.func @transform_7(%arg0: i32) -> (i32, i32) {
    %c0_i32 = arith.constant 0 : i32
    %c0_i32_0 = arith.constant 0 : i32
    %c0_i32_1 = arith.constant 0 : i32
    return %c0_i32, %c0_i32_0 : i32, i32
  }
  func.func @transform_8(%arg0: i32) -> (i32, i32) {
    %c0_i32 = arith.constant 0 : i32
    %c0_i32_0 = arith.constant 0 : i32
    %c0_i32_1 = arith.constant 0 : i32
    return %c0_i32, %c0_i32_0 : i32, i32
  }
  func.func @transform_9(%arg0: i32) -> (i32, i32) {
    %c0_i32 = arith.constant 0 : i32
    %c0_i32_0 = arith.constant 0 : i32
    return %arg0, %c0_i32 : i32, i32
  }
}

</mosaic_0001>

<bundles_post_ra>
// kernel: tpu_custom_call.1
= control target key start
LH: loop header
LB: loop body
LE: loop exit
PB: predicated region body
PF: predicated region fallthrough
CT: control target
= control target key end

     0   :  { %14 = vsyncpa [#allocation3], 0  ;;  %s1017_s0 = inlined_call_operand.hbm [shape: f32[8,16], index: 0, kind: input, shape index: {}]   ;;  %s1018_s1 = inlined_call_operand.hbm [shape: bf16[16,128], index: 1, kind: input, shape index: {}]   ;;  %s1019_s2 = inlined_call_operand.vmem [shape: f32[1,128], index: 2, kind: input, shape index: {}]   ;;  %s1020_s3 = inlined_call_operand.hbm [shape: bf16[128,128], index: 3, kind: input, shape index: {}]   ;;  %s1021_s4 = inlined_call_operand.vmem [shape: f32[1,128], index: 4, kind: input, shape index: {}]   ;;  %s1022_s5 = inlined_call_operand.hbm [shape: bf16[128,128], index: 5, kind: input, shape index: {}]   ;;  %s1023_s6 = inlined_call_operand.vmem [shape: f32[1,128], index: 6, kind: input, shape index: {}]   ;;  %s1024_s7 = inlined_call_operand.hbm [shape: bf16[128,128], index: 7, kind: input, shape index: {}]   ;;  %s1025_s8 = inlined_call_operand.vmem [shape: f32[1,128], index: 8, kind: input, shape index: {}]   ;;  %s1026_s9 = inlined_call_operand.hbm [shape: f32[8,8], index: 9, kind: output, shape index: {}]  }
   0x1   :  { %15 = vsyncpa [#allocation6], 0 }
   0x2   :  { %16 = vsyncpa [#allocation9], 0 }
   0x3   :  { %17 = vsyncpa [#allocation4], 0  ;;  %s828_s30 = smov [#allocation5]   ;;  %s688_s13 = scalar_lea.hbm %s1018_s1, 128 }
   0x4   :  { %s33_s10 = sshll.u32 %s828_s30, 4  ;;  %p689_p0 = scmp.ne.s32.totalorder %s1018_s1, %s688_s13  ;;  %s34_s10 = int_to_ptr.vmem [resolvable:$true] %s33_s10 }
   0x5   :  { %p692_p1 = scmp.lt.u32.totalorder %s688_s13, %s1018_s1 }
   0x7   :  { %p694_p2 = pnand %p692_p1, %p689_p0 }
   0x9   :  { %697 = shalt.err (!%p694_p2)
}
   0xa   :  { %s698_s18 = scalar_lea.vmem %s34_s10, 128  ;;  %p703_p4 = scmp.lt.s32.totalorder %s34_s10, %s34_s10 }
   0xb   :  { %p699_p3 = scmp.ne.s32.totalorder %s34_s10, %s698_s18  ;;  %p704_p5 = scmp.lt.s32.totalorder %s698_s18, %s698_s18 }
   0xd   :  { %p705_p6 = por %p704_p5, %p703_p4 }
   0xf   :  { %p706_p7 = pnand %p705_p6, %p699_p3 }
  0x11   :  { %709 = shalt.err (!%p706_p7)
}
  0x12   :  { %s829_s19 = smov 64   ;;  %s830_s20 = smov 4  }
  0x13   :  { %39 = dma.hbm_to_vmem [thread:$0]  %s1018_s1, 128, %s34_s10, [#allocation6], %s829_s19, %s829_s19, %s830_s20  }
  0x14   :  { %s831_s23 = smov [#allocation8]   ;;  %s832_s25 = smov [#allocation2]  }
  0x15   :  { %s61_s24 = sshll.u32 %s831_s23, 4  ;;  %s24_s26 = sshll.u32 %s832_s25, 4  ;;  %s62_s24 = int_to_ptr.vmem [resolvable:$true] %s61_s24  ;;  %s25_s26 = int_to_ptr.vmem [resolvable:$true] %s24_s26 }
  0x16   :  { %s710_s29 = scalar_lea.hbm %s1022_s5, 1024 }
  0x17   :  { %p711_p8 = scmp.ne.s32.totalorder %s1022_s5, %s710_s29  ;;  %p714_p9 = scmp.lt.u32.totalorder %s710_s29, %s1022_s5 }
  0x19   :  { %p716_p10 = pnand %p714_p9, %p711_p8 }
  0x1b   :  { %719 = shalt.err (!%p716_p10)
}
  0x1c   :  { %s720_s1 = scalar_lea.vmem %s62_s24, 1024  ;;  %p725_p12 = scmp.lt.s32.totalorder %s62_s24, %s62_s24 }
  0x1d   :  { %p721_p11 = scmp.ne.s32.totalorder %s62_s24, %s720_s1  ;;  %p726_p13 = scmp.lt.s32.totalorder %s720_s1, %s720_s1 }
  0x1f   :  { %p727_p0 = por %p726_p13, %p725_p12 }
  0x21   :  { %p728_p1 = pnand %p727_p0, %p721_p11 }
  0x23   :  { %731 = shalt.err (!%p728_p1)
}
  0x24   :  { %67 = dma.hbm_to_vmem [thread:$0]  %s1022_s5, 1024, %s62_s24, [#allocation9], %s829_s19, %s829_s19, %s830_s20  }
  0x25   :  { %s732_s17 = scalar_lea.hbm %s1017_s0, 128 }
  0x26   :  { %p733_p2 = scmp.ne.s32.totalorder %s1017_s0, %s732_s17  ;;  %p736_p3 = scmp.lt.u32.totalorder %s732_s17, %s1017_s0 }
  0x28   :  { %p738_p4 = pnand %p736_p3, %p733_p2 }
  0x2a   :  { %741 = shalt.err (!%p738_p4)
}
  0x2b   :  { %s742_s25 = scalar_lea.vmem %s25_s26, 128  ;;  %p747_p6 = scmp.lt.s32.totalorder %s25_s26, %s25_s26 }
  0x2c   :  { %p743_p5 = scmp.ne.s32.totalorder %s25_s26, %s742_s25  ;;  %p748_p7 = scmp.lt.s32.totalorder %s742_s25, %s742_s25 }
  0x2e   :  { %p749_p8 = por %p748_p7, %p747_p6 }
  0x30   :  { %p750_p9 = pnand %p749_p8, %p743_p5 }
  0x32   :  { %753 = shalt.err (!%p750_p9)
}
  0x33   :  { %27 = dma.hbm_to_vmem [thread:$0]  %s1017_s0, 128, %s25_s26, [#allocation3]  }
  0x34   :  { %s833_s27 = smov [#allocation7]   ;;  %s834_s29 = smov [#allocation10]  }
  0x35   :  { %s47_s28 = sshll.u32 %s833_s27, 4  ;;  %s75_s30 = sshll.u32 %s834_s29, 4  ;;  %s48_s28 = int_to_ptr.vmem [resolvable:$true] %s47_s28  ;;  %s76_s30 = int_to_ptr.vmem [resolvable:$true] %s75_s30 }
  0x36   :  { %s754_s13 = scalar_lea.hbm %s1020_s3, 1024 }
  0x37   :  { %p755_p10 = scmp.ne.s32.totalorder %s1020_s3, %s754_s13  ;;  %p758_p11 = scmp.lt.u32.totalorder %s754_s13, %s1020_s3 }
  0x39   :  { %p760_p12 = pnand %p758_p11, %p755_p10 }
  0x3b   :  { %763 = shalt.err (!%p760_p12)
}
  0x3c   :  { %s764_s0 = scalar_lea.vmem %s48_s28, 1024  ;;  %p769_p0 = scmp.lt.s32.totalorder %s48_s28, %s48_s28 }
  0x3d   :  { %p765_p13 = scmp.ne.s32.totalorder %s48_s28, %s764_s0  ;;  %p770_p1 = scmp.lt.s32.totalorder %s764_s0, %s764_s0 }
  0x3f   :  { %p771_p2 = por %p770_p1, %p769_p0 }
  0x41   :  { %p772_p3 = pnand %p771_p2, %p765_p13 }
  0x43   :  { %775 = shalt.err (!%p772_p3)
}
  0x44   :  { %53 = dma.hbm_to_vmem [thread:$0]  %s1020_s3, 1024, %s48_s28, [#allocation6], %s829_s19, %s829_s19, %s830_s20  }
  0x45   :  { %s776_s21 = scalar_lea.hbm %s1024_s7, 1024 }
  0x46   :  { %p777_p4 = scmp.ne.s32.totalorder %s1024_s7, %s776_s21  ;;  %p780_p5 = scmp.lt.u32.totalorder %s776_s21, %s1024_s7 }
  0x48   :  { %p782_p6 = pnand %p780_p5, %p777_p4 }
  0x4a   :  { %785 = shalt.err (!%p782_p6)
}
  0x4b   :  { %s786_s24 = scalar_lea.vmem %s76_s30, 1024  ;;  %p791_p8 = scmp.lt.s32.totalorder %s76_s30, %s76_s30 }
  0x4c   :  { %p787_p7 = scmp.ne.s32.totalorder %s76_s30, %s786_s24  ;;  %p792_p9 = scmp.lt.s32.totalorder %s786_s24, %s786_s24 }
  0x4e   :  { %p793_p10 = por %p792_p9, %p791_p8 }
  0x50   :  { %p794_p11 = pnand %p793_p10, %p787_p7 }
  0x52   :  { %797 = shalt.err (!%p794_p11)
}
  0x53   :  { %81 = dma.hbm_to_vmem [thread:$0]  %s1024_s7, 1024, %s76_s30, [#allocation9], %s829_s19, %s829_s19, %s830_s20  }
  0x54   :  { %820 = dma.done.wait [#allocation3], 128  }
  0x55   :  { %821 = vsyncadd [#allocation3], 4294967168 }
  0x56   :  { %822 = dma.done.wait [#allocation6], 1152  }
  0x57   :  { %823 = vsyncadd [#allocation6], 4294966144 }
  0x58   :  { %824 = dma.done.wait [#allocation9], 2048  }
  0x59   :  { %825 = vsyncadd [#allocation9], 4294965248  ;;  %v835_v0 = vmov 0.0   ;;  %vm836_vm0 = vmmov 0   ;;  %v659_v1 = vld [vmem:[#allocation5] sm:$0xff]   ;;  %v100_v2 = vld [vmem:[#allocation2] sm:$0xff] }
  0x5a   :  { %583 = vmatprep.subr.bf16.mxu0 %v835_v0  ;;  %585 = vmatprep.mubr.msk.bf16.mxu0 %vm836_vm0, %v835_v0  ;;  %v101_v3 = vpack.c.bf16 %v100_v2, %v100_v2  ;;  %vm117_vm1 = vcmask 130048   ;;  %v660_v4 = vld [vmem:[#allocation7] sm:$0xff]   ;;  %v661_v5 = vld [vmem:[#allocation7 + $0x8] sm:$0xff]   ;;  %v662_v6 = vld [vmem:[#allocation7 + $0x10] sm:$0xff]   ;;  %vm505_vm2 = vcmask 64512  }
  0x5b   :  { %589 = vmatprep.subr.bf16.mxu1 %v835_v0  ;;  %605 = vmatprep.mubr.msk.bf16.mxu1 %vm836_vm0, %v835_v0  ;;  %v663_v7 = vld [vmem:[#allocation7 + $0x18] sm:$0xff]   ;;  %v664_v8 = vld [vmem:[#allocation7 + $0x20] sm:$0xff]   ;;  %v665_v9 = vld [vmem:[#allocation7 + $0x28] sm:$0xff]  }
  0x5c   :  { %584 = vmatpush3.bf16.msra.mxu0 %v659_v1  ;;  %590 = vmatpush3.bf16.msra.mxu1 %v660_v4  ;;  %v666_v10 = vld [vmem:[#allocation7 + $0x30] sm:$0xff]   ;;  %v667_v11 = vld [vmem:[#allocation7 + $0x38] sm:$0xff]   ;;  %v668_v12 = vld [vmem:[#allocation8] sm:$0xff]  }
  0x5d   :  { %609 = vmatprep.subr.bf16.mxu0 %v835_v0  ;;  %591 = vmatprep.subr.bf16.mxu1 %v835_v0  ;;  %v669_v13 = vld [vmem:[#allocation8 + $0x8] sm:$0xff]   ;;  %v670_v14 = vld [vmem:[#allocation8 + $0x10] sm:$0xff]   ;;  %v671_v15 = vld [vmem:[#allocation8 + $0x18] sm:$0xff]  }
  0x5e   :  { %v672_v16 = vld [vmem:[#allocation8 + $0x20] sm:$0xff]   ;;  %v673_v17 = vld [vmem:[#allocation8 + $0x28] sm:$0xff]   ;;  %v524_v18 = vld [vmem:[%s1019_s2] ss:$0 sm:$0xff] }
  0x5f   :  { %586 = vmatmul.mubr.msk.bf16.vlgmr.msra.gmra.mrb[0].mxu0 %vm117_vm1, %v101_v3  ;;  %v674_v26 = vld [vmem:[#allocation8 + $0x30] sm:$0xff]   ;;  %v675_v27 = vld [vmem:[#allocation8 + $0x38] sm:$0xff]   ;;  %v676_v28 = vld [vmem:[#allocation10] sm:$0xff]  }
  0x60   :  { %625 = vmatprep.mubr.msk.bf16.mxu0 %vm836_vm0, %v835_v0  ;;  %592 = vmatpush3.bf16.msra.mxu1 %v661_v5  ;;  %v677_v29 = vld [vmem:[#allocation10 + $0x8] sm:$0xff]   ;;  %v678_v30 = vld [vmem:[#allocation10 + $0x10] sm:$0xff]   ;;  %v679_v31 = vld [vmem:[#allocation10 + $0x18] sm:$0xff]  }
  0x61   :  { %593 = vmatprep.subr.bf16.mxu1 %v835_v0  ;;  %610 = vmatpush3.bf16.msra.mxu0 %v668_v12  ;;  %v680_v32 = vld [vmem:[#allocation10 + $0x20] sm:$0xff]   ;;  %v681_v33 = vld [vmem:[#allocation10 + $0x28] sm:$0xff]   ;;  %v527_v34 = vld [vmem:[%s1021_s4] ss:$0 sm:$0xff] }
  0x62   :  { %611 = vmatprep.subr.bf16.mxu0 %v835_v0  ;;  %v682_v42 = vld [vmem:[#allocation10 + $0x30] sm:$0xff]   ;;  %v683_v43 = vld [vmem:[#allocation10 + $0x38] sm:$0xff]  }
  0x63   :  { %v536_v44 = vld [vmem:[%s1023_s6] ss:$0 sm:$0xff]  ;;  %s837_s6 = smov [#allocation11]  }
  0x64   :  { %594 = vmatpush3.bf16.msra.mxu1 %v662_v6  ;;  %v545_v52 = vld [vmem:[%s1025_s8] ss:$0 sm:$0xff]  ;;  %s513_s11 = sshll.u32 %s837_s6, 4  ;;  %s514_s11 = int_to_ptr.vmem [resolvable:$true] %s513_s11 }
  0x65   :  { %595 = vmatprep.subr.bf16.mxu1 %v835_v0  ;;  %612 = vmatpush3.bf16.msra.mxu0 %v669_v13  ;;  %s798_s12 = scalar_lea.vmem %s514_s11, 128  ;;  %p803_p13 = scmp.lt.s32.totalorder %s514_s11, %s514_s11 }
  0x66   :  { %613 = vmatprep.subr.bf16.mxu0 %v835_v0  ;;  %p799_p12 = scmp.ne.s32.totalorder %s514_s11, %s798_s12  ;;  %p804_p0 = scmp.lt.s32.totalorder %s798_s12, %s798_s12 }
  0x68   :  { %596 = vmatpush3.bf16.msra.mxu1 %v663_v7  ;;  %p805_p1 = por %p804_p0, %p803_p13 }
  0x69   :  { %597 = vmatprep.subr.bf16.mxu1 %v835_v0  ;;  %614 = vmatpush3.bf16.msra.mxu0 %v670_v14 }
  0x6a   :  { %615 = vmatprep.subr.bf16.mxu0 %v835_v0  ;;  %p806_p2 = pnand %p805_p1, %p799_p12 }
  0x6c   :  { %598 = vmatpush3.bf16.msra.mxu1 %v664_v8 }
  0x6d   :  { %599 = vmatprep.subr.bf16.mxu1 %v835_v0  ;;  %616 = vmatpush3.bf16.msra.mxu0 %v671_v15 }
  0x6e   :  { %617 = vmatprep.subr.bf16.mxu0 %v835_v0 }
  0x70   :  { %600 = vmatpush3.bf16.msra.mxu1 %v665_v9 }
  0x71   :  { %601 = vmatprep.subr.bf16.mxu1 %v835_v0  ;;  %618 = vmatpush3.bf16.msra.mxu0 %v672_v16 }
  0x72   :  { %619 = vmatprep.subr.bf16.mxu0 %v835_v0 }
  0x74   :  { %602 = vmatpush3.bf16.msra.mxu1 %v666_v10 }
  0x75   :  { %603 = vmatprep.subr.bf16.mxu1 %v835_v0  ;;  %620 = vmatpush3.bf16.msra.mxu0 %v673_v17 }
  0x76   :  { %621 = vmatprep.subr.bf16.mxu0 %v835_v0 }
  0x78   :  { %604 = vmatpush3.bf16.msra.mxu1 %v667_v11 }
  0x79   :  { %629 = vmatprep.subr.bf16.mxu1 %v835_v0  ;;  %622 = vmatpush3.bf16.msra.mxu0 %v674_v26 }
  0x7a   :  { %623 = vmatprep.subr.bf16.mxu0 %v835_v0 }
  0x7d   :  { %624 = vmatpush3.bf16.msra.mxu0 %v675_v27 }
 0x132   :  { %v155_v19 = vpop.f32.mrb[0].mxu0 }
 0x133   :  { %v156_v20 = vadd.f32 %v524_v18, %v155_v19  ;;  %v587_v21 = vpop.f32.mrb[1].mxu0 }
 0x134   :  { %v158_v22 = vpop.f32.mrb[2].mxu0 }
 0x135   :  { %v161_v23 = vmax.f32 %v156_v20, 0.0  ;;  %v588_v24 = vpop.f32.mrb[3].mxu0 }
 0x137   :  { %v162_v25 = vpack.c.bf16 %v161_v23, %v161_v23 }
 0x139   :  { %606 = vmatmul.mubr.bf16.vlgmr.msra.gmra.mrb[0].mxu1 %v162_v25 }
 0x13a   :  { %645 = vmatprep.mubr.msk.bf16.mxu1 %vm836_vm0, %v835_v0  ;;  %630 = vmatpush3.bf16.msra.mxu1 %v676_v28 }
 0x13b   :  { %631 = vmatprep.subr.bf16.mxu1 %v835_v0 }
 0x13e   :  { %632 = vmatpush3.bf16.msra.mxu1 %v677_v29 }
 0x13f   :  { %633 = vmatprep.subr.bf16.mxu1 %v835_v0 }
 0x142   :  { %634 = vmatpush3.bf16.msra.mxu1 %v678_v30 }
 0x143   :  { %635 = vmatprep.subr.bf16.mxu1 %v835_v0 }
 0x146   :  { %636 = vmatpush3.bf16.msra.mxu1 %v679_v31 }
 0x147   :  { %637 = vmatprep.subr.bf16.mxu1 %v835_v0 }
 0x14a   :  { %638 = vmatpush3.bf16.msra.mxu1 %v680_v32 }
 0x14b   :  { %639 = vmatprep.subr.bf16.mxu1 %v835_v0 }
 0x14e   :  { %640 = vmatpush3.bf16.msra.mxu1 %v681_v33 }
 0x14f   :  { %641 = vmatprep.subr.bf16.mxu1 %v835_v0 }
 0x152   :  { %642 = vmatpush3.bf16.msra.mxu1 %v682_v42 }
 0x153   :  { %643 = vmatprep.subr.bf16.mxu1 %v835_v0 }
 0x156   :  { %644 = vmatpush3.bf16.msra.mxu1 %v683_v43 }
 0x20c   :  { %v268_v35 = vpop.f32.mrb[0].mxu1 }
 0x20d   :  { %v269_v36 = vadd.f32 %v527_v34, %v268_v35  ;;  %v607_v37 = vpop.f32.mrb[1].mxu1 }
 0x20e   :  { %v271_v38 = vpop.f32.mrb[2].mxu1 }
 0x20f   :  { %v274_v39 = vmax.f32 %v269_v36, 0.0  ;;  %v608_v40 = vpop.f32.mrb[3].mxu1 }
 0x211   :  { %v275_v41 = vpack.c.bf16 %v274_v39, %v274_v39 }
 0x213   :  { %626 = vmatmul.mubr.bf16.vlgmr.msra.gmra.mrb[4].mxu0 %v275_v41 }
 0x2e6   :  { %v381_v45 = vpop.f32.mrb[4].mxu0 }
 0x2e7   :  { %v382_v46 = vadd.f32 %v536_v44, %v381_v45  ;;  %v627_v47 = vpop.f32.mrb[5].mxu0 }
 0x2e8   :  { %v384_v48 = vpop.f32.mrb[6].mxu0 }
 0x2e9   :  { %v387_v49 = vmax.f32 %v382_v46, 0.0  ;;  %v628_v50 = vpop.f32.mrb[7].mxu0 }
 0x2eb   :  { %v388_v51 = vpack.c.bf16 %v387_v49, %v387_v49 }
 0x2ed   :  { %646 = vmatmul.mubr.bf16.vlgmr.msra.gmra.mrb[4].mxu1 %v388_v51 }
 0x3c0   :  { %v494_v53 = vpop.f32.mrb[4].mxu1 }
 0x3c1   :  { %v495_v54 = vadd.f32 %v545_v52, %v494_v53  ;;  %v647_v55 = vpop.f32.mrb[5].mxu1 }
 0x3c2   :  { %v497_v56 = vpop.f32.mrb[6].mxu1 }
 0x3c3   :  { %v500_v57 = vsub.f32 0.0, %v495_v54  ;;  %v648_v58 = vpop.f32.mrb[7].mxu1 }
 0x3c5   :  { %v501_v59 = vmul.f32 1.442695, %v500_v57 }
 0x3c7   :  { %684 = vpow2.f32 %v501_v59 }
 0x3d1   :  { %v685_v60 = vpop.eup %684 }
 0x3d2   :  { %v503_v61 = vadd.f32 1.0, %v685_v60 }
 0x3d4   :  { %686 = vrcp.f32 %v503_v61 }
 0x3de   :  { %v687_v62 = vpop.eup %686 }
 0x3df   :  { %506 = vst.msk [vmem:[#allocation11] sm:$0xff] %vm505_vm2, %v687_v62 }
 0x3e0   :  { %809 = shalt.err (!%p806_p2)
}
 0x3e1   :  { %s810_s1 = scalar_lea.hbm %s1026_s9, 128 }
 0x3e2   :  { %p811_p3 = scmp.ne.s32.totalorder %s1026_s9, %s810_s1  ;;  %p814_p4 = scmp.lt.u32.totalorder %s810_s1, %s1026_s9 }
 0x3e4   :  { %p816_p5 = pnand %p814_p4, %p811_p3 }
 0x3e6   :  { %819 = shalt.err (!%p816_p5)
}
 0x3e7   :  { %516 = dma.vmem_to_hbm [thread:$0]  %s514_s11, 128, %s1026_s9, [#allocation4]  }
 0x3e8   :  { %826 = dma.done.wait [#allocation4], 128  }
 0x3e9   :  { %827 = vsyncadd [#allocation4], 4294967168 }
 0x3ea   :  { %520 = vsyncpa [#allocation3], 1 }
 0x3eb   :  { %521 = vsyncpa [#allocation6], 1 }
 0x3ec   :  { %522 = vsyncpa [#allocation9], 1 }
 0x3ed   :  { %523 = vsyncpa [#allocation4], 1 }

</bundles_post_ra>
